<compile_context>
chip_gen: v7x
topology: tpu7x:2x2x1
jax: 0.10.0
libtpu: 0.0.40
codegen_flags: <defaults>
</compile_context>

<pallas_src>
import functools
import math

import jax
import jax.numpy as jnp
from jax.experimental import pallas as pl
from jax.experimental.pallas import tpu as pltpu

_LANE = 128


def _round_up(v: int, mult: int) -> int:
    return ((v + mult - 1) // mult) * mult


def _bimap_kernel(x_ref, w_ref, o_ref, *, assume_symmetric: bool):
    """Per grid step: Y_b = Wᵀ X_b W for a block of `bb` matrices, using two batched matmuls."""
    bb, n, _ = x_ref.shape          # padded n
    m = o_ref.shape[-1]             # padded m
    w = w_ref[...]                  # (n, m), resident across the grid

    # First matmul, batched over the block:  Z[(b,i), j] = sum_k X[b,i,k] W[k,j]
    xf = x_ref[...].reshape(bb * n, n)                                   # free leading-dim merge
    z = jnp.dot(xf, w, preferred_element_type=jnp.float32)              # (bb*n, m)
    z3 = z.astype(x_ref.dtype).reshape(bb, n, m)                        # free leading-dim split

    # Per-matrix transpose on the XLU, then the second batched matmul:
    #   T_b = Z_bᵀ W = Wᵀ X_bᵀ W
    zt = jnp.swapaxes(z3, -1, -2)                                        # (bb, m, n)
    t = jnp.dot(zt.reshape(bb * m, n), w, preferred_element_type=jnp.float32)   # (bb*m, m)
    t3 = t.reshape(bb, m, m)

    if not assume_symmetric:
        # General (possibly non-symmetric) X:  Y_b = (Wᵀ X_bᵀ W)ᵀ = Wᵀ X_b W.
        t3 = jnp.swapaxes(t3, -1, -2)

    o_ref[...] = t3.astype(o_ref.dtype)


def bimap(x: jax.Array, w: jax.Array, *, manifold: str = "stiefel",
          assume_symmetric: bool = True, block_batch: int | None = None,
          vmem_budget_bytes: int = 18 * 1024 * 1024,
          vmem_limit_bytes: int = 32 * 1024 * 1024) -> jax.Array:
    """Pallas TPU implementation of BiMap.forward.

    x: (..., n, n) batch of matrices (SPD in SPDNet/TSMNet usage).
    w: (n, m) for 'stiefel'/'euclidean', (m, n) for 'sphere'.
    assume_symmetric: True (default) matches BiMap's SPD inputs and skips one small
        output transpose; set False for exact Wᵀ X W semantics on arbitrary X.
    Passing bf16 x/w is encouraged: the op is memory-bound on all TPU generations and
    bf16 halves HBM traffic; accumulation stays f32 inside the kernel.
    Returns (..., m, m) in x.dtype.
    """
    if manifold == "sphere":
        # Sphere forward is W X Wᵀ with W: (m, n) == stiefel formula with W := Wᵀ.
        w = jnp.swapaxes(w, -1, -2)
    elif manifold not in ("stiefel", "euclidean"):
        raise NotImplementedError(manifold)

    w = w.astype(x.dtype)
    n, m = w.shape
    assert x.shape[-1] == n and x.shape[-2] == n, (x.shape, w.shape)

    lead = x.shape[:-2]
    batch = math.prod(lead) if lead else 1
    itemsize = jnp.dtype(x.dtype).itemsize
    sub = (8 * 4) // itemsize            # sublane packing: f32 -> 8, bf16 -> 16, int8 -> 32

    # Pad n, m to the sublane multiple so all in-kernel reshapes are free leading-dim
    # merges/splits (no relayouts). Zero-padding W kills all padded contributions, so the
    # top-left (m, m) block of the padded result equals the true Y.
    n_p = _round_up(n, sub)
    m_p = _round_up(m, sub)

    xb = x.reshape(batch, n, n)
    if n_p != n or m_p != m:
        # TODO(synk): for real SPDNet sizes (e.g. 50, 22, 100) prefer padding W / the SPD
        # features once at the model level instead of paying this per-call pad of X.
        xb = jnp.pad(xb, ((0, 0), (0, n_p - n), (0, n_p - n)))
        w = jnp.pad(w, ((0, n_p - n), (0, m_p - m)))

    # --- VMEM footprint per matrix, with (sublane, 128)-lane padding of every buffer ---
    x_mat = n_p * _round_up(n_p, _LANE) * itemsize          # X block element
    y_mat = m_p * _round_up(m_p, _LANE) * itemsize          # Y block element
    z_mat = n_p * _round_up(m_p, _LANE) * 4                 # f32 accumulator of X·W
    zt_mat = m_p * _round_up(n_p, _LANE) * itemsize         # transposed Z
    t_mat = m_p * _round_up(m_p, _LANE) * 4                 # f32 accumulator of Zᵀ·W
    # 2x for double-buffered input/output blocks, + single-buffered temporaries
    # (loaded X value, Z, Zt, T).
    per_mat = 2 * (x_mat + y_mat) + (x_mat + z_mat + zt_mat + t_mat)

    if block_batch is None:
        bb = max(1, vmem_budget_bytes // per_mat)
        bb = min(bb, batch)
        if batch >= 4:
            # Keep >= 4 grid steps: pipelining + >= 2 steps per TensorCore on v7x.
            bb = min(bb, pl.cdiv(batch, 4))
    else:
        bb = int(block_batch)
    bb = max(1, min(bb, batch))

    grid = (pl.cdiv(batch, bb),)         # ragged tail handled by Pallas masked writeback

    kernel = functools.partial(_bimap_kernel, assume_symmetric=assume_symmetric)

    out = pl.pallas_call(
        kernel,
        out_shape=jax.ShapeDtypeStruct((batch, m_p, m_p), x.dtype),
        grid_spec=pltpu.PrefetchScalarGridSpec(
            num_scalar_prefetch=0,
            grid=grid,
            in_specs=[
                pl.BlockSpec((bb, n_p, n_p), lambda b: (b, 0, 0)),   # X block (streamed)
                pl.BlockSpec((n_p, m_p), lambda b: (0, 0)),          # W (resident)
            ],
            out_specs=pl.BlockSpec((bb, m_p, m_p), lambda b: (b, 0, 0)),
        ),
        compiler_params=pltpu.CompilerParams(
            dimension_semantics=("parallel",),            # batch axis: megacore-shardable
            vmem_limit_bytes=vmem_limit_bytes,
        ),
        cost_estimate=pl.CostEstimate(
            flops=2 * batch * n * m * (n + m),
            transcendentals=0,
            bytes_accessed=batch * (n * n + m * m) * itemsize + n * m * itemsize,
        ),
    )(xb, w)

    if m_p != m:
        out = out[:, :m, :m]
    return out.reshape(*lead, m, m)


# TODO(synk): reset_parameters (SVD / sym_invsqrtm Stiefel initialization) is parameter
# initialization on the manifold, not part of the forward pass; not translated to Pallas.


if __name__ == "__main__":
    key = jax.random.PRNGKey(0)
    k1, k2, k3, k4 = jax.random.split(key, 4)

    n, m = 32, 16

    # (1) Stiefel manifold, SPD inputs (the standard SPDNet/TSMNet use), symmetric fast path.
    a = jax.random.normal(k1, (2, 4, n, n), dtype=jnp.float32) / jnp.sqrt(n)
    x_spd = jnp.matmul(a, jnp.swapaxes(a, -1, -2))                    # SPD, entries O(1)
    w = jax.random.normal(k2, (n, m), dtype=jnp.float32) / jnp.sqrt(n)

    y = jax.block_until_ready(bimap(x_spd, w, manifold="stiefel"))
    y_ref = jnp.matmul(jnp.matmul(jnp.swapaxes(w, -1, -2), x_spd), w)
    assert y.shape == (2, 4, m, m), y.shape
    assert y.dtype == x_spd.dtype
    assert jnp.allclose(y, y_ref, atol=1e-2, rtol=1e-2), float(jnp.max(jnp.abs(y - y_ref)))

    # (2) General (non-symmetric) X, exact-semantics path; batch=10 exercises the ragged tail block.
    x_gen = jax.random.normal(k3, (2, 5, n, n), dtype=jnp.float32)
    y2 = jax.block_until_ready(bimap(x_gen, w, manifold="stiefel", assume_symmetric=False))
    y2_ref = jnp.matmul(jnp.matmul(jnp.swapaxes(w, -1, -2), x_gen), w)
    assert jnp.allclose(y2, y2_ref, atol=1e-2, rtol=1e-2), float(jnp.max(jnp.abs(y2 - y2_ref)))

    # (3) Sphere manifold: Y = W X Wᵀ with W: (m, n).
    w_s = jax.random.normal(k4, (m, n), dtype=jnp.float32) / jnp.sqrt(n)
    y3 = jax.block_until_ready(bimap(x_spd, w_s, manifold="sphere"))
    y3_ref = jnp.matmul(jnp.matmul(w_s, x_spd), jnp.swapaxes(w_s, -1, -2))
    assert jnp.allclose(y3, y3_ref, atol=1e-2, rtol=1e-2), float(jnp.max(jnp.abs(y3 - y3_ref)))

    print("KERNEL_OK")
</pallas_src>

<mosaic_0001>
module attributes {stable_mosaic.version = 11 : i64} {
  func.func @_bimap_kernel(%arg0: i32, %arg1: memref<2x32x32xf32, #tpu.memory_space<vmem>>, %arg2: memref<32x16xf32, #tpu.memory_space<vmem>>, %arg3: memref<2x16x16xf32, #tpu.memory_space<vmem>>) attributes {dimension_semantics = [#tpu.dimension_semantics<parallel>], iteration_bounds = array<i64: 4>, scalar_prefetch = 0 : i64, scratch_operands = 0 : i64, tpu.core_type = #tpu.core_type<tc>, window_params = [{transform_indices = @transform_0, window_bounds = array<i64: 2, 32, 32>}, {pipeline_mode = #tpu.pipeline_mode<synchronous>, transform_indices = @transform_1, window_bounds = array<i64: 32, 16>}, {transform_indices = @transform_2, window_bounds = array<i64: 2, 16, 16>}]} {
    %c0 = arith.constant 0 : index
    %c0_0 = arith.constant 0 : index
    %0 = vector.load %arg2[%c0, %c0_0] : memref<32x16xf32, #tpu.memory_space<vmem>>, vector<32x16xf32>
    %c0_1 = arith.constant 0 : index
    %c0_2 = arith.constant 0 : index
    %c0_3 = arith.constant 0 : index
    %1 = vector.load %arg1[%c0_1, %c0_2, %c0_3] : memref<2x32x32xf32, #tpu.memory_space<vmem>>, vector<2x32x32xf32>
    %2 = vector.shape_cast %1 : vector<2x32x32xf32> to vector<64x32xf32>
    %cst = arith.constant dense<0.000000e+00> : vector<64x16xf32>
    %3 = tpu.matmul %2, %0, %cst {dimension_numbers = #tpu.dot_dimension_numbers<[1], [0], [0], [1], [0, 0, 1, 1], [], []>} : vector<64x32xf32>, vector<32x16xf32>, vector<64x16xf32> -> vector<64x16xf32>
    %4 = vector.shape_cast %3 : vector<64x16xf32> to vector<2x32x16xf32>
    %5 = tpu.transpose %4, [0, 2, 1] : vector<2x32x16xf32> -> vector<2x16x32xf32>
    %6 = vector.shape_cast %5 : vector<2x16x32xf32> to vector<32x32xf32>
    %cst_4 = arith.constant dense<0.000000e+00> : vector<32x16xf32>
    %7 = tpu.matmul %6, %0, %cst_4 {dimension_numbers = #tpu.dot_dimension_numbers<[1], [0], [0], [1], [0, 0, 1, 1], [], []>} : vector<32x32xf32>, vector<32x16xf32>, vector<32x16xf32> -> vector<32x16xf32>
    %8 = vector.shape_cast %7 : vector<32x16xf32> to vector<2x16x16xf32>
    %c0_5 = arith.constant 0 : index
    %c0_6 = arith.constant 0 : index
    %c0_7 = arith.constant 0 : index
    %9 = vector.load %arg3[%c0_5, %c0_6, %c0_7] : memref<2x16x16xf32, #tpu.memory_space<vmem>>, vector<2x16x16xf32>
    tpu.vector_store %arg3[%c0_5, %c0_6, %c0_7], %8 {strides = array<i32>} : memref<2x16x16xf32, #tpu.memory_space<vmem>>, vector<2x16x16xf32>,
    return
  }
  func.func @transform_0(%arg0: i32) -> (i32, i32, i32) {
    %c0_i32 = arith.constant 0 : i32
    %c0_i32_0 = arith.constant 0 : i32
    %c0_i32_1 = arith.constant 0 : i32
    return %arg0, %c0_i32, %c0_i32_0 : i32, i32, i32
  }
  func.func @transform_1(%arg0: i32) -> (i32, i32) {
    %c0_i32 = arith.constant 0 : i32
    %c0_i32_0 = arith.constant 0 : i32
    %c0_i32_1 = arith.constant 0 : i32
    return %c0_i32, %c0_i32_0 : i32, i32
  }
  func.func @transform_2(%arg0: i32) -> (i32, i32, i32) {
    %c0_i32 = arith.constant 0 : i32
    %c0_i32_0 = arith.constant 0 : i32
    %c0_i32_1 = arith.constant 0 : i32
    return %arg0, %c0_i32, %c0_i32_0 : i32, i32, i32
  }
}

</mosaic_0001>

<bundles_post_ra>
// kernel: tpu_custom_call.1
= control target key start
LH: loop header
LB: loop body
LE: loop exit
PB: predicated region body
PF: predicated region fallthrough
CT: control target
= control target key end

     0   :  { %7 = vsyncpa [#allocation3], 0  ;;  %s1028_s0 = inlined_call_operand.hbm [shape: f32[8,32,32], index: 0, kind: input, shape index: {}]   ;;  %s1029_s1 = inlined_call_operand.vmem [shape: f32[32,16], index: 1, kind: input, shape index: {}]   ;;  %s1030_s2 = inlined_call_operand.hbm [shape: f32[8,16,16], index: 2, kind: output, shape index: {}]  }
   0x1   :  { %9 = vsyncpa [#allocation3 + $0x1], 0 }
   0x2   :  { %10 = vsyncpa [#allocation4], 0 }
   0x3   :  { %12 = vsyncpa [#allocation4 + $0x1], 0  ;;  %s833_s9 = smov 0   ;;  %s835_s10 = smov 0  }
   0x4   :  { %s837_s11 = smov 0   ;;  %s839_s12 = smov 0  }
   0x5 LB: > { %s854_s13 = sadd.s32 4294967295, %s810_s12   ;;  %s561_s14 = sadd.s32 4294967294, %s810_s12   ;;  %s810_s12 = sphi %s839_s12, %s1042_s12   ;;  %s806_s11 = sphi %s837_s11, %s1041_s11   ;;  %s802_s10 = sphi %s835_s10, %s1040_s10   ;;  %s798_s9 = sphi %s833_s9, %s1039_s9  }
   0x6   : > { %s858_s15 = sadd.s32 1, %s810_s12   ;;  %s25_s16 = sadd.s32 1, %s806_s11 }
   0x7   : > { %s22_s17 = ssub.s32 %s810_s12, %s858_s15  ;;  %p32_p0 = scmp.ne.s32.totalorder %s806_s11, %s802_s10 }
   0x8   : > { %p23_p1 = scmp.eq.s32.totalorder %s22_s17, 0  ;;  %p33_p2 = scmp.eq.s32.totalorder %s810_s12, 0 }
   0x9   : > { %p38_p3 = scmp.ne.s32.totalorder %s802_s10, %s798_s9  ;;  %p39_p4 = scmp.eq.s32.totalorder %s854_s13, 0 }
   0xa   : > { %s870_s18 = scalar_select %p23_p1, %s806_s11, %s25_s16  }
   0xb   : > { %p872_p5 = por %p33_p2, %p32_p0  ;;  %p876_p6 = por %p39_p4, %p38_p3 }
   0xc   : > { %p83_p7 = scmp.eq.s32.totalorder %s854_s13, 3  ;;  %p89_p8 = scmp.eq.s32.totalorder %s561_s14, 3 }
   0xd   : > { %p675_p9 = scmp.lt.s32.totalorder %s810_s12, 4  ;;  %s112_s23 = sand.u32 1, %s806_s11  }
   0xe   : > { %p882_p10 = por %p83_p7, %p32_p0  ;;  %p886_p11 = por %p89_p8, %p38_p3 }
   0xf   : > { %s590_s24 = sshll.u32 %s810_s12, 10  ;;  %s564_s25 = sshll.u32 %s112_s23, 6 }
  0x10   : > { %s1034_s21 = scalar_select %p882_p10, 1, 0 }
  0x11   : > { %s1035_s22 = scalar_select %p886_p11, 1, 0 }
  0x12   : > { %s895_s28 = scalar_lea.hbm %s1028_s0, %s590_s24  ;;  %s116_s29 = scalar_lea.vmem [#allocation2], %s564_s25 }
  0x13   : > { %s124_s30 = sshll.u32 %s116_s29, 4  ;;  %p899_p12 = pnand %p675_p9, %p872_p5  ;;  %s903_s30 = int_to_ptr.vmem [resolvable:$true] %s124_s30 }
  0x14   : > { %s905_s4 = scalar_lea.sflag [#allocation3], %s112_s23  ;;  %s714_s5 = scalar_lea.hbm %s895_s28, 1024 }
  0x15   : > { %p715_p13 = scmp.ne.s32.totalorder %s895_s28, %s714_s5  ;;  %p716_p0 = pneg %p899_p12 }
  0x16   : > { %s719_s8 = scalar_lea.hbm %s1028_s0, 4096  ;;  %p720_p3 = scmp.lt.u32.totalorder %s895_s28, %s1028_s0 }
  0x17   : > { %p717_p1 = pnand %p716_p0, %p715_p13  ;;  %p721_p4 = scmp.lt.u32.totalorder %s719_s8, %s714_s5 }
  0x18   : > { %p723_p7 = scmp.lt.u32.totalorder %s714_s5, %s895_s28 }
  0x19   : > { %p718_p2 = pneg %p717_p1  ;;  %p722_p5 = por %p721_p4, %p720_p3 }
  0x1b   : > { %p724_p8 = por %p723_p7, %p722_p5 }
  0x1d   : > { %p725_p9 = pnand %p724_p8, %p718_p2 }
  0x1f   : > { %728 = shalt.err (!%p725_p9)
}
  0x20   : > { %s729_s17 = scalar_lea.vmem %s903_s30, 1024  ;;  %s812_s19 = smov [#allocation2]  }
  0x21   : > { %p730_p13 = scmp.ne.s32.totalorder %s903_s30, %s729_s17  ;;  %s734_s23 = sshll.u32 %s812_s19, 4  ;;  %s735_s23 = int_to_ptr.vmem [resolvable:$false] %s734_s23 }
  0x22   : > { %s736_s24 = scalar_lea.vmem %s735_s23, 2048  ;;  %p737_p10 = scmp.lt.s32.totalorder %s903_s30, %s735_s23 }
  0x23   : > { %p732_p1 = pnand %p730_p13, %p716_p0  ;;  %p738_p3 = scmp.lt.s32.totalorder %s736_s24, %s729_s17 }
  0x25   : > { %p733_p11 = pneg %p732_p1  ;;  %p739_p4 = por %p738_p3, %p737_p10 }
  0x27   : > { %p740_p5 = pnand %p739_p4, %p733_p11 }
  0x29   : > { %743 = shalt.err (!%p740_p5)
}
  0x2a   : > { %s813_s25 = smov 128   ;;  %s814_s26 = smov 8  }
  0x2b   : > { %670 = dma.hbm_to_vmem [thread:$0]  (!%p899_p12), %s895_s28, 1024, %s903_s30, %s905_s4, %s813_s25, %s813_s25, %s814_s26  }
  0x2c   : > { %p568_p0 = scmp.ge.s32.totalorder %s810_s12, 1  ;;  %p132_p2 = scmp.lt.s32.totalorder %s810_s12, 5 }
  0x2e   : > { %p133_p7 = pnand %p568_p0, %p132_p2 }
  0x2f   : > { %s936_s27 = sand.u32 (!%p133_p7), 1, %s802_s10  }
  0x30   : > { %136 = sbr.rel (%p133_p7) target bundleno = 649 (0x289), region = 28  ;;  %s569_s29 = sshll.u32 (!%p133_p7), %s936_s27, 6 }
  0x31   : > { %s139_s5 = scalar_lea.sflag (!%p133_p7), [#allocation3], %s936_s27  ;;  %s940_s6 = scalar_lea.vmem (!%p133_p7), [#allocation2], %s569_s29 }
  0x37   : > { %789 = dma.done.wait (%p876_p6), %s139_s5, 1024  }
  0x38   : > { %791 = vsyncadd (%p876_p6), %s139_s5, 4294966272  ;;  %vm177_vm0 = vcmask 261120   ;;  %v165_v0 = vld [vmem:[%s1029_s1] sm:$0xff]  ;;  %v166_v1 = vld [vmem:[%s1029_s1 + $0x8] sm:$0xff]  ;;  %s570_s16 = sshll.u32 %s936_s27, 5  ;;  %vm468_vm1 = vcmask 130048  }
  0x39   : > { %v167_v2 = vld [vmem:[%s1029_s1 + $0x10] sm:$0xff]  ;;  %v647_v3 = vpack.c.bf16 %v166_v1, %v165_v0  ;;  %v168_v4 = vld [vmem:[%s1029_s1 + $0x18] sm:$0xff]  ;;  %v169_v5 = vld [vmem:[%s940_s6] sm:$0xff]  ;;  %s162_s17 = scalar_lea.vmem [#allocation5], %s570_s16  ;;  %s592_s23 = sshll.u32 %s854_s13, 9 }
  0x3a   : > { %v651_v6 = vpack.c.bf16 %v168_v4, %v167_v2  ;;  %621 = vmatprep.mubr.msk.f32.mxu0 %vm177_vm0, %v169_v5  ;;  %v170_v7 = vld [vmem:[%s940_s6 + $0x8] sm:$0xff]  ;;  %v171_v8 = vld [vmem:[%s940_s6 + $0x10] sm:$0xff]  ;;  %v172_v9 = vld [vmem:[%s940_s6 + $0x18] sm:$0xff]  ;;  %s488_s19 = sshll.u32 %s162_s17, 4  ;;  %s985_s26 = scalar_lea.hbm %s1030_s2, %s592_s23  ;;  %s980_s19 = int_to_ptr.vmem [resolvable:$true] %s488_s19 }
  0x3b   : > { %648 = vmatprep.subr.bf16.mxu0 %v647_v3  ;;  %656 = vmatprep.subr.bf16.mxu1 %v647_v3  ;;  %v173_v10 = vld [vmem:[%s940_s6 + $0x20] sm:$0xff]  ;;  %v174_v11 = vld [vmem:[%s940_s6 + $0x28] sm:$0xff]  ;;  %v175_v12 = vld [vmem:[%s940_s6 + $0x30] sm:$0xff]  ;;  %s474_s29 = scalar_lea.sflag [#allocation4], %s936_s27  ;;  %s744_s5 = scalar_lea.vmem %s980_s19, 512 }
  0x3c   : > { %650 = vmatpush3.bf16.msra.mxu0 %v647_v3  ;;  %658 = vmatpush3.bf16.msra.mxu1 %v647_v3  ;;  %v176_v13 = vld [vmem:[%s940_s6 + $0x38] sm:$0xff]  ;;  %p745_p6 = scmp.ne.s32.totalorder %s980_s19, %s744_s5  ;;  %p1037_p10 = scmp.ne.s32.totalorder %s1034_s21, 0 }
  0x3d   : > { %652 = vmatprep.subr.bf16.mxu0 %v651_v6  ;;  %660 = vmatprep.subr.bf16.mxu1 %v651_v6  ;;  %s815_s13 = smov [#allocation5]  }
  0x3e   : > { %p746_p11 = pnand %p745_p6, %p1037_p10  ;;  %s748_s6 = sshll.u32 %s815_s13, 4  ;;  %s749_s6 = int_to_ptr.vmem [resolvable:$false] %s748_s6 }
  0x3f   : > { %s750_s28 = scalar_lea.vmem %s749_s6, 1024  ;;  %p751_p8 = scmp.lt.s32.totalorder %s980_s19, %s749_s6 }
  0x40   : > { %654 = vmatpush3.bf16.msra.mxu0 %v651_v6  ;;  %662 = vmatpush3.bf16.msra.mxu1 %v651_v6  ;;  %p747_p12 = pneg %p746_p11  ;;  %p752_p9 = scmp.lt.s32.totalorder %s750_s28, %s744_s5 }
  0x42   : > { %p753_p13 = por %p752_p9, %p751_p8 }
  0x43   : > { %622 = vmatmul.mubr.msk.f32.vlgmr.msra.gmra.mrb[0].mxu0 %vm177_vm0, %v170_v7 }
  0x44   : > { %624 = vmatprep.mubr.msk.f32.mxu0 %vm177_vm0, %v171_v8  ;;  %p754_p1 = pnand %p753_p13, %p747_p12 }
  0x47   : > { %625 = vmatmul.mubr.msk.f32.gmra.mrb[2].mxu0 %vm177_vm0, %v172_v9 }
  0x48   : > { %627 = vmatprep.mubr.msk.f32.mxu0 %vm177_vm0, %v173_v10 }
  0x4b   : > { %628 = vmatmul.mubr.msk.f32.gmra.mrb[4].mxu0 %vm177_vm0, %v174_v11 }
  0x4c   : > { %630 = vmatprep.mubr.msk.f32.mxu0 %vm177_vm0, %v175_v12 }
  0x4f   : > { %631 = vmatmul.mubr.msk.f32.gmra.mrb[6].mxu0 %vm177_vm0, %v176_v13 }
 0x116   : > { %v623_v14 = vpop.f32.mrb[0].mxu0 }
 0x117   : > { %v268_v15 = vpop.f32.mrb[1].mxu0 }
 0x118   : > { %307 = vxpose.xlu0.b32.start [1/4] (short) (narrow) %v268_v15, 16 }
 0x11a   : > { %v626_v16 = vpop.f32.mrb[2].mxu0 }
 0x11b   : > { %v278_v17 = vpop.f32.mrb[3].mxu0 }
 0x11c   : > { %308 = vxpose.xlu0.b32.cont [2/4] (short) (narrow) %v623_v14, 16 }
 0x11e   : > { %v629_v18 = vpop.f32.mrb[4].mxu0 }
 0x11f   : > { %v288_v19 = vpop.f32.mrb[5].mxu0 }
 0x120   : > { %309 = vxpose.xlu0.b32.cont [3/4] (short) (narrow) %v278_v17, 16  ;;  %339 = vxpose.xlu1.b32.start [1/4] (short) (narrow) %v288_v19, 16 }
 0x122   : > { %v632_v20 = vpop.f32.mrb[6].mxu0 }
 0x123   : > { %v298_v21 = vpop.f32.mrb[7].mxu0 }
 0x124   : > { %310 = vxpose.xlu0.b32.end [4/4] (short) (narrow) %v626_v16, 16  ;;  %340 = vxpose.xlu1.b32.cont [2/4] (short) (narrow) %v629_v18, 16 }
 0x128   : > { %341 = vxpose.xlu1.b32.cont [3/4] (short) (narrow) %v298_v21, 16 }
 0x12c   : > { %342 = vxpose.xlu1.b32.end [4/4] (short) (narrow) %v632_v20, 16 }
 0x198   : > { %v323_v22 = vpop.trf.xlu0 }
 0x199   : > { %641 = vmatprep.mubr.msk.f32.mxu1 %vm177_vm0, %v323_v22 }
 0x19c   : > { %v324_v23 = vpop.trf.xlu0 }
 0x19d   : > { %642 = vmatmul.mubr.msk.f32.vlgmr.msra.gmra.mrb[0].mxu1 %vm177_vm0, %v324_v23 }
 0x1a0   : > { %v355_v24 = vpop.trf.xlu1 }
 0x1a1   : > { %644 = vmatprep.mubr.msk.f32.mxu1 %vm177_vm0, %v355_v24 }
 0x1a4   : > { %v356_v25 = vpop.trf.xlu1 }
 0x1a5   : > { %645 = vmatmul.mubr.msk.f32.gmra.mrb[2].mxu1 %vm177_vm0, %v356_v25 }
 0x270   : > { %v643_v26 = vpop.f32.mrb[0].mxu1 }
 0x271   : > { %470 = vst.msk [vmem:[%s162_s17 + $0x8] sm:$0xff] %vm468_vm1, %v643_v26  ;;  %v449_v27 = vpop.f32.mrb[1].mxu1 }
 0x272   : > { %469 = vst.msk [vmem:[%s162_s17] sm:$0xff] %vm468_vm1, %v449_v27 }
 0x278   : > { %v646_v28 = vpop.f32.mrb[2].mxu1 }
 0x279   : > { %472 = vst.msk [vmem:[%s162_s17 + $0x18] sm:$0xff] %vm468_vm1, %v646_v28  ;;  %v459_v29 = vpop.f32.mrb[3].mxu1 }
 0x27a   : > { %471 = vst.msk [vmem:[%s162_s17 + $0x10] sm:$0xff] %vm468_vm1, %v459_v29 }
 0x27b   : > { %757 = shalt.err (!%p754_p1)
}
 0x27c   : > { %s758_s30 = scalar_lea.hbm %s985_s26, 512  ;;  %s762_s7 = scalar_lea.hbm %s1030_s2, 2048 }
 0x27d   : > { %p759_p3 = scmp.ne.s32.totalorder %s985_s26, %s758_s30  ;;  %p763_p0 = scmp.lt.u32.totalorder %s985_s26, %s1030_s2 }
 0x27e   : > { %p764_p2 = scmp.lt.u32.totalorder %s762_s7, %s758_s30  ;;  %p766_p6 = scmp.lt.u32.totalorder %s758_s30, %s985_s26 }
 0x27f   : > { %p760_p4 = pnand %p759_p3, %p1037_p10 }
 0x280   : > { %p765_p7 = por %p764_p2, %p763_p0 }
 0x281   : > { %p761_p5 = pneg %p760_p4 }
 0x282   : > { %p767_p11 = por %p766_p6, %p765_p7 }
 0x284   : > { %p768_p12 = pnand %p767_p11, %p761_p5 }
 0x286   : > { %771 = shalt.err (!%p768_p12)
}
 0x287   : > { %s816_s20 = smov 128   ;;  %s817_s16 = smov 8  }
 0x288   : > { %665 = dma.vmem_to_hbm [thread:$0]  (%p1037_p10), %s980_s19, 512, %s985_s26, %s474_s29, %s816_s20, %s816_s20, %s817_s16  }
 0x289 PF: > { %p676_p8 = scmp.ge.s32.totalorder %s810_s12, 2  ;;  %s503_s17 = sand.u32 1, %s798_s9  }
 0x28a   : > { %p1038_p9 = scmp.ne.s32.totalorder %s1035_s22, 0  ;;  %s504_s23 = scalar_lea.sflag [#allocation4], %s503_s17 }
 0x28c   : > { %p672_p13 = pnand %p676_p8, %p1038_p9 }
 0x28e   : > { %793 = dma.done.wait (!%p672_p13), %s504_s23, 512  }
 0x28f   : > { %795 = vsyncadd (!%p672_p13), %s504_s23, 4294966784  ;;  %p15_p1 = scmp.ge.s32.totalorder %s858_s15, 6   ;;  %s1039_s9 = smov %s802_s10 }
 0x290   : > { %s1040_s10 = smov %s806_s11  ;;  %s1041_s11 = smov %s870_s18 }
 0x291   : > { %s1042_s12 = smov %s858_s15  ;;  %17 = sbr.rel (!%p15_p1) target bundleno = 5 (0x5), region = 73 }
 0x298   :  { %509 = vsyncpa [#allocation3], 1 }
 0x299   :  { %511 = vsyncpa [#allocation3 + $0x1], 1 }
 0x29a   :  { %512 = vsyncpa [#allocation4], 1 }
 0x29b   :  { %514 = vsyncpa [#allocation4 + $0x1], 1 }

</bundles_post_ra>
